<compile_context>
chip_gen: v7x
topology: tpu7x:2x2x1
jax: 0.10.0
libtpu: 0.0.40
codegen_flags: <defaults>
</compile_context>

<pallas_src>
import math
import functools

import jax
import jax.numpy as jnp
from jax import lax
from jax.experimental import pallas as pl
from jax.experimental.pallas import tpu as pltpu


# ----------------------------------------------------------------------------
# helpers
# ----------------------------------------------------------------------------

def _round_up(x, m):
    return ((x + m - 1) // m) * m


@functools.lru_cache(maxsize=None)
def _vmem_limit_bytes():
    """Per-generation scoped-VMEM budget (v5e/v6e 128 MiB phys -> ~96 MiB,
    v7x 64 MiB phys -> ~48 MiB)."""
    cap = None
    try:
        cap = getattr(pltpu.get_tpu_info(), 'vmem_capacity_bytes', None)
    except Exception:
        cap = None
    if not cap:
        cap = 64 * 1024 * 1024
    return int(min(max(cap - 16 * 1024 * 1024, 32 * 1024 * 1024),
                   96 * 1024 * 1024))


def _tile_prefs():
    big = _vmem_limit_bytes() >= 64 * 1024 * 1024
    # (row-tile pref, contraction-tile pref, output-lane-tile pref)
    return (512 if big else 256, 1024 if big else 512, 512)


def _choose_tile(dim, pref, base):
    """Largest tile (multiple of `base`, <= pref) that divides round_up(dim, base).

    Unlike the previous version this never pads `dim` beyond its `base`
    alignment, so e.g. dim=768 with pref=512 gives tile=384 / padded=768
    instead of tile=512 / padded=1024 (+33% wasted flops and DMA).
    """
    padded = _round_up(dim, base)
    pref = max(base, (pref // base) * base)
    best = base
    t = base
    top = min(pref, padded)
    while t <= top:
        if padded % t == 0:
            best = t
        t += base
    return best, padded


def _pad2d(x, rp, cp):
    r, c = x.shape
    if r == rp and c == cp:
        return x
    return jnp.pad(x, ((0, rp - r), (0, cp - c)))


def _apply_act(y, act):
    if act == 'relu':
        return jnp.maximum(y, 0.0)
    if act == 'tanh':
        return jnp.tanh(y)
    if act == 'gelu':
        return jax.nn.gelu(y, approximate=False)   # torch GELU default = exact erf
    if act == 'sigmoid':
        return jax.nn.sigmoid(y)
    return y


# ----------------------------------------------------------------------------
# fused tiled Linear / matmul (+ bias) (+ LayerNorm | folded-BN affine) (+ act)
# ----------------------------------------------------------------------------

def _linear_kernel(*refs, act, norm, eps, n_true):
    if norm == 'none':
        x_ref, w_ref, b_ref, o_ref, acc_ref = refs
        s_ref = t_ref = None
    else:
        x_ref, w_ref, b_ref, s_ref, t_ref, o_ref, acc_ref = refs

    k = pl.program_id(2)

    @pl.when(k == 0)
    def _():
        acc_ref[...] = jnp.zeros_like(acc_ref)

    acc_ref[...] += jnp.dot(x_ref[...], w_ref[...],
                            preferred_element_type=jnp.float32)

    @pl.when(k == pl.num_programs(2) - 1)
    def _():
        y = acc_ref[...] + b_ref[...]
        if norm == 'layernorm':
            # statistics over the true (unpadded) feature count, in f32
            col = lax.broadcasted_iota(jnp.int32, y.shape, 1)
            valid = col < n_true
            inv_n = 1.0 / float(n_true)
            mu = jnp.sum(jnp.where(valid, y, 0.0), axis=-1, keepdims=True) * inv_n
            d = jnp.where(valid, y - mu, 0.0)
            var = jnp.sum(d * d, axis=-1, keepdims=True) * inv_n
            y = d * lax.rsqrt(var + eps) * s_ref[...] + t_ref[...]
        elif norm == 'affine':      # eval-mode BatchNorm folded to scale/shift
            y = y * s_ref[...] + t_ref[...]
        o_ref[...] = _apply_act(y, act).astype(o_ref.dtype)


def pallas_linear(x, w, b=None, *, act='none', norm='none',
                  scale=None, shift=None, eps=1e-5, out_dtype=jnp.float32):
    """out = act(norm(x @ w + b)); bf16 streaming inputs, f32 accumulation."""
    M, K = x.shape
    Kw, N = w.shape
    assert K == Kw

    tm_pref, tk_pref, tn_pref = _tile_prefs()
    tk, Kp = _choose_tile(K, tk_pref, 128)

    if norm == 'layernorm':
        # LayerNorm needs the full feature row resident in one block;
        # shrink the row tile to keep acc + buffers within the VMEM budget.
        Np = _round_up(N, 128)
        tn = Np
        row_bytes = Np * 12 + Kp * 4
        tm_pref = max(16, min(tm_pref,
                              (_vmem_limit_bytes() // 3) // max(row_bytes, 1)))
    else:
        tn, Np = _choose_tile(N, tn_pref, 128)
    tm, Mp = _choose_tile(M, tm_pref, 16)   # 16-row tiles (bf16 sublane packing)

    # TODO(synk): int8 (v5e/v6e) / fp8 (v7x) weight quantization would halve
    # weight DMA for the big esm input layer; accuracy-gated, left out here.
    xp = _pad2d(x.astype(jnp.bfloat16), Mp, Kp)
    wp = _pad2d(w.astype(jnp.bfloat16), Kp, Np)
    b = jnp.zeros((N,), jnp.float32) if b is None else jnp.asarray(b)
    bp = _pad2d(b.reshape(1, N).astype(jnp.float32), 1, Np)

    operands = [xp, wp, bp]
    in_specs = [
        pl.BlockSpec((tm, tk), lambda i, j, k: (i, k)),
        pl.BlockSpec((tk, tn), lambda i, j, k: (k, j)),
        pl.BlockSpec((1, tn), lambda i, j, k: (0, j)),
    ]
    if norm != 'none':
        scale = jnp.ones((N,), jnp.float32) if scale is None else jnp.asarray(scale)
        shift = jnp.zeros((N,), jnp.float32) if shift is None else jnp.asarray(shift)
        operands.append(_pad2d(scale.reshape(1, N).astype(jnp.float32), 1, Np))
        operands.append(_pad2d(shift.reshape(1, N).astype(jnp.float32), 1, Np))
        in_specs.append(pl.BlockSpec((1, tn), lambda i, j, k: (0, j)))
        in_specs.append(pl.BlockSpec((1, tn), lambda i, j, k: (0, j)))

    grid = (Mp // tm, Np // tn, Kp // tk)
    kernel = functools.partial(_linear_kernel, act=act, norm=norm,
                               eps=eps, n_true=N)
    out = pl.pallas_call(
        kernel,
        out_shape=jax.ShapeDtypeStruct((Mp, Np), out_dtype),
        grid=grid,
        in_specs=in_specs,
        out_specs=pl.BlockSpec((tm, tn), lambda i, j, k: (i, j)),
        scratch_shapes=[pltpu.VMEM((tm, tn), jnp.float32)],
        compiler_params=pltpu.CompilerParams(
            dimension_semantics=("parallel", "parallel", "arbitrary"),
            vmem_limit_bytes=_vmem_limit_bytes()),
    )(*operands)
    return out[:M, :N]


# --- dual-input linear: act(x1 @ w1 + x2 @ w2 + b)  (fused concat+linear) ----

def _dual_linear_kernel(x1_ref, w1_ref, x2_ref, w2_ref, b_ref, o_ref, acc_ref, *, act):
    k = pl.program_id(2)

    @pl.when(k == 0)
    def _():
        acc_ref[...] = jnp.zeros_like(acc_ref)

    acc_ref[...] += (
        jnp.dot(x1_ref[...], w1_ref[...], preferred_element_type=jnp.float32)
        + jnp.dot(x2_ref[...], w2_ref[...], preferred_element_type=jnp.float32))

    @pl.when(k == pl.num_programs(2) - 1)
    def _():
        o_ref[...] = _apply_act(acc_ref[...] + b_ref[...], act).astype(o_ref.dtype)


def pallas_dual_linear(x1, w1, x2, w2, b, *, act='none', out_dtype=jnp.float32):
    M, K1 = x1.shape
    M2, K2 = x2.shape
    assert M == M2
    N = w1.shape[1]
    assert w2.shape[1] == N and w1.shape[0] == K1 and w2.shape[0] == K2

    tm_pref, tk_pref, tn_pref = _tile_prefs()
    tm, Mp = _choose_tile(M, tm_pref, 16)
    tk, Kp = _choose_tile(max(K1, K2), tk_pref, 128)
    tn, Np = _choose_tile(N, tn_pref, 128)

    x1p = _pad2d(x1.astype(jnp.bfloat16), Mp, Kp)
    x2p = _pad2d(x2.astype(jnp.bfloat16), Mp, Kp)
    w1p = _pad2d(w1.astype(jnp.bfloat16), Kp, Np)
    w2p = _pad2d(w2.astype(jnp.bfloat16), Kp, Np)
    bp = _pad2d(jnp.asarray(b).reshape(1, N).astype(jnp.float32), 1, Np)

    grid = (Mp // tm, Np // tn, Kp // tk)
    out = pl.pallas_call(
        functools.partial(_dual_linear_kernel, act=act),
        out_shape=jax.ShapeDtypeStruct((Mp, Np), out_dtype),
        grid=grid,
        in_specs=[
            pl.BlockSpec((tm, tk), lambda i, j, k: (i, k)),
            pl.BlockSpec((tk, tn), lambda i, j, k: (k, j)),
            pl.BlockSpec((tm, tk), lambda i, j, k: (i, k)),
            pl.BlockSpec((tk, tn), lambda i, j, k: (k, j)),
            pl.BlockSpec((1, tn), lambda i, j, k: (0, j)),
        ],
        out_specs=pl.BlockSpec((tm, tn), lambda i, j, k: (i, j)),
        scratch_shapes=[pltpu.VMEM((tm, tn), jnp.float32)],
        compiler_params=pltpu.CompilerParams(
            dimension_semantics=("parallel", "parallel", "arbitrary"),
            vmem_limit_bytes=_vmem_limit_bytes()),
    )(x1p, w1p, x2p, w2p, bp)
    return out[:M, :N]


# ----------------------------------------------------------------------------
# GCN layer:  Â @ (X @ W) + b  (+ optional folded eval-BN, activation)
# ----------------------------------------------------------------------------

def pallas_gcn_layer(a_norm, x, w, b, *, act='none',
                     bn_scale=None, bn_shift=None, out_dtype=jnp.bfloat16):
    # TODO(synk): a_norm is static and extremely sparse for real GO graphs —
    # a CSR scalar-prefetch (PrefetchScalarGridSpec) aggregation or a
    # block-nonzero mask + pl.when tile skip would cut the N^2 DMA 10-100x.
    K = x.shape[1]
    F = w.shape[1]
    norm = 'affine' if bn_scale is not None else 'none'
    if K < F:
        # contract the smaller dim first: (A @ X) @ W
        h = pallas_linear(a_norm, x, out_dtype=jnp.bfloat16)
        return pallas_linear(h, w, b, act=act, norm=norm,
                             scale=bn_scale, shift=bn_shift, out_dtype=out_dtype)
    else:
        # A @ (X @ W)
        h = pallas_linear(x, w, out_dtype=jnp.bfloat16)
        return pallas_linear(a_norm, h, b, act=act, norm=norm,
                             scale=bn_scale, shift=bn_shift, out_dtype=out_dtype)


# ----------------------------------------------------------------------------
# fused label attention, streamed over the label axis (flash-style softmax)
# ----------------------------------------------------------------------------

def _attention_kernel(q_ref, z_ref, wk_ref, bk_ref, wv_ref, bv_ref,
                      wf_ref, bf_ref, o_ref,
                      qbf_sc, m_sc, l_sc, acc_sc,
                      *, scale, n_true, tile_n):
    j = pl.program_id(1)

    @pl.when(j == 0)
    def _():
        qbf_sc[...] = q_ref[...].astype(jnp.bfloat16)
        m_sc[...] = jnp.full(m_sc.shape, -jnp.inf, dtype=m_sc.dtype)
        l_sc[...] = jnp.zeros(l_sc.shape, dtype=l_sc.dtype)
        acc_sc[...] = jnp.zeros(acc_sc.shape, dtype=acc_sc.dtype)

    zt = z_ref[...]                                            # bf16 label tile
    k = (jnp.dot(zt, wk_ref[...], preferred_element_type=jnp.float32)
         + bk_ref[...]).astype(jnp.bfloat16)
    v = (jnp.dot(zt, wv_ref[...], preferred_element_type=jnp.float32)
         + bv_ref[...]).astype(jnp.bfloat16)

    # q @ k^T on the bf16 MXU path (contract last dims, no explicit transpose);
    # mask padded label columns on the f32 result (-1e30 would overflow bf16).
    s = lax.dot_general(qbf_sc[...], k, (((1,), (1,)), ((), ())),
                        preferred_element_type=jnp.float32) * scale
    col = lax.broadcasted_iota(jnp.int32, s.shape, 1) + j * tile_n
    s = jnp.where(col < n_true, s, -1e30)

    m_new = jnp.maximum(m_sc[...], jnp.max(s, axis=-1, keepdims=True))
    alpha = jnp.exp(m_sc[...] - m_new)
    p = jnp.exp(s - m_new)
    l_sc[...] = alpha * l_sc[...] + jnp.sum(p, axis=-1, keepdims=True)
    acc_sc[...] = alpha * acc_sc[...] + jnp.dot(
        p.astype(jnp.bfloat16), v, preferred_element_type=jnp.float32)
    m_sc[...] = m_new

    @pl.when(j == pl.num_programs(1) - 1)
    def _():
        vals = acc_sc[...] / l_sc[...]          # finalize runs once: exact recip
        out = jnp.dot((vals + q_ref[...]).astype(wf_ref.dtype), wf_ref[...],
                      preferred_element_type=jnp.float32) + bf_ref[...]
        o_ref[...] = jax.nn.sigmoid(out).astype(o_ref.dtype)


def pallas_label_attention(x, z, wq, bq, wk, bk, wv, bv, wf, bf):
    """sigmoid(final(softmax(q k^T / sqrt(E)) v + q)), streamed over labels."""
    B = x.shape[0]
    N, Dk = z.shape
    E = wq.shape[1]
    P = wf.shape[1]

    # Hoisted q projection: a proper tiled matmul outside the streaming loop.
    q = pallas_linear(x, wq, bq, out_dtype=jnp.float32)

    Ep = _round_up(E, 128)
    Dkp = _round_up(Dk, 128)
    Pp = _round_up(P, 128)
    tb, Bp = _choose_tile(B, 256, 16)      # parallel row tiles (feeds 2 TCs on v7x)
    tn, Np = _choose_tile(N, 512, 128)     # streamed label-axis tile

    qp = _pad2d(q, Bp, Ep)
    zp = _pad2d(z.astype(jnp.bfloat16), Np, Dkp)
    wkp = _pad2d(wk.astype(jnp.bfloat16), Dkp, Ep)
    wvp = _pad2d(wv.astype(jnp.bfloat16), Dkp, Ep)
    wfp = _pad2d(wf.astype(jnp.bfloat16), Ep, Pp)
    bkp = _pad2d(bk.reshape(1, E).astype(jnp.float32), 1, Ep)
    bvp = _pad2d(bv.reshape(1, E).astype(jnp.float32), 1, Ep)
    bfp = _pad2d(bf.reshape(1, P).astype(jnp.float32), 1, Pp)

    kernel = functools.partial(_attention_kernel,
                               scale=1.0 / math.sqrt(E), n_true=N, tile_n=tn)
    # TODO(synk): add pipeline_mode=pl.Buffered(3) on the z spec if a profile
    # shows exposed label-stream DMA for small E.
    out = pl.pallas_call(
        kernel,
        out_shape=jax.ShapeDtypeStruct((Bp, Pp), jnp.float32),
        grid=(Bp // tb, Np // tn),
        in_specs=[
            pl.BlockSpec((tb, Ep), lambda i, j: (i, 0)),    # q (f32, per row tile)
            pl.BlockSpec((tn, Dkp), lambda i, j: (j, 0)),   # z (bf16, streamed)
            pl.BlockSpec((Dkp, Ep), lambda i, j: (0, 0)),   # wk
            pl.BlockSpec((1, Ep), lambda i, j: (0, 0)),     # bk
            pl.BlockSpec((Dkp, Ep), lambda i, j: (0, 0)),   # wv
            pl.BlockSpec((1, Ep), lambda i, j: (0, 0)),     # bv
            pl.BlockSpec((Ep, Pp), lambda i, j: (0, 0)),    # wf
            pl.BlockSpec((1, Pp), lambda i, j: (0, 0)),     # bf
        ],
        out_specs=pl.BlockSpec((tb, Pp), lambda i, j: (i, 0)),
        scratch_shapes=[
            pltpu.VMEM((tb, Ep), jnp.bfloat16),   # bf16 copy of q
            pltpu.VMEM((tb, 1), jnp.float32),     # running max
            pltpu.VMEM((tb, 1), jnp.float32),     # running denom
            pltpu.VMEM((tb, Ep), jnp.float32),    # output accumulator
        ],
        compiler_params=pltpu.CompilerParams(
            dimension_semantics=("parallel", "arbitrary"),
            vmem_limit_bytes=_vmem_limit_bytes()),
    )(qp, zp, wkp, bkp, wvp, bvp, wfp, bfp)
    return out[:B, :P]


# ----------------------------------------------------------------------------
# Model glue (plain JAX): params, MLP wiring, scatter, adjacency normalization
# ----------------------------------------------------------------------------

def init_linear(key, fan_in, fan_out):
    kw, kb = jax.random.split(key)
    bound = 1.0 / math.sqrt(fan_in)
    w = jax.random.uniform(kw, (fan_in, fan_out), jnp.float32, -bound, bound)
    b = jax.random.uniform(kb, (fan_out,), jnp.float32, -bound, bound)
    return w, b


def mlp_forward(x, p):
    """MLP.forward(features, residual=True), eval mode (dropouts = identity)."""
    feats = [x]
    for layer in p['layers']:
        ins = layer['inputs']
        if len(ins) == 1:
            xin = feats[ins[0]]
        else:
            # TODO(synk): multi-input concat could also be fused as a sum of matmuls.
            xin = jnp.concatenate([feats[i] for i in ins], axis=1)
        h = pallas_linear(xin, layer['w'], layer['b'],
                          act=layer['act'],
                          norm='layernorm' if layer['ln'] else 'none',
                          scale=layer['gamma'], shift=layer['beta'],
                          out_dtype=jnp.bfloat16)
        feats.append(h)
    x_skip = pallas_linear(feats[0], p['skip1_w'], p['skip1_b'],
                           out_dtype=jnp.bfloat16)
    # skip_final: cat([x, x_skip]) @ W + b  ==  x @ W_top + x_skip @ W_bot + b
    w = p['skipf_w']
    half = w.shape[0] // 2
    return pallas_dual_linear(feats[-1], w[:half], x_skip, w[half:], p['skipf_b'])


def gcn_normalized_adjacency(edge_index, num_nodes):
    row, col = edge_index
    a = jnp.zeros((num_nodes, num_nodes), jnp.float32).at[row, col].set(1.0)
    a = a + jnp.eye(num_nodes, dtype=jnp.float32)        # add self-loops
    deg = jnp.sum(a, axis=1)
    dinv = 1.0 / jnp.sqrt(deg)
    return a * dinv[:, None] * dinv[None, :]


def precompute_label_embedding(params, static):
    """z = LabelEncoder(biobert, edge_index), eval mode.

    Depends only on static graph buffers and GCN/BN params (not on x), so it
    is computed ONCE and reused across every forward call — removing the
    dense N_labels^2 adjacency matmuls from the inference path entirely.
    """
    eps = 1e-5
    bn_scale = params['bn_gamma'] / jnp.sqrt(params['bn_var'] + eps)
    bn_shift = params['bn_beta'] - params['bn_mean'] * bn_scale
    h = pallas_gcn_layer(static['a_norm'], static['biobert'],
                         params['gcn1_w'], params['gcn1_b'],
                         act='tanh', bn_scale=bn_scale, bn_shift=bn_shift)
    z = pallas_gcn_layer(static['a_norm'], h, params['gcn2_w'], params['gcn2_b'],
                         act='none')
    return z


def tfun_forward(x, params, static, z):
    """TFun.forward for ont != 'bp' (no rare_2 branch), eval mode."""
    # sub-model MLPs (TFun_submodel with full=True -> raw MLP outputs)
    freq_out = mlp_forward(x, params['esm_freq'])
    rare_out = mlp_forward(x, params['esm_rare'])

    # scatter_accross: place freq / rare scores into the full label vector
    # TODO(synk): could write directly into a shared (B, out_shape) buffer via
    # input_output_aliases instead of two XLA scatters.
    B = x.shape[0]
    des = jnp.zeros((B, static['out_shape']), jnp.float32)
    des = des.at[:, static['freq_idx']].set(freq_out)
    des = des.at[:, static['rare_idx']].set(rare_out)

    # joint_embedding (Attention) + final sigmoid, streamed over labels
    out = pallas_label_attention(des, z,
                                 params['wq'], params['bq'],
                                 params['wk'], params['bk'],
                                 params['wv'], params['bv'],
                                 params['wf'], params['bf'])
    return out


# ----------------------------------------------------------------------------
# Main
# ----------------------------------------------------------------------------

if __name__ == "__main__":
    key = jax.random.PRNGKey(0)

    # small shapes (stand-ins for the real config-driven sizes)
    B = 2            # batch
    D_IN = 32        # protein embedding dim (stand-in for esm2_t48 5120)
    HIDDEN = 64      # MLP hidden
    OUT_SHAPE = 16   # ont out_shape (ont='mf', non-bp)
    N_FREQ, N_RARE = 10, 6
    N_NODES = OUT_SHAPE   # one GO label node per output index
    BIO_DIM = 24     # biobert node feature dim (stand-in for 768)
    GCN_OUT = 32     # label embedding dim (stand-in for 1024)
    EMB = 32         # attention embedding_size (stand-in for 256)

    keys = list(jax.random.split(key, 24))
    kit = iter(keys)

    def make_mlp_params(out_dim):
        w0, b0 = init_linear(next(kit), D_IN, HIDDEN)
        w1, b1 = init_linear(next(kit), HIDDEN, out_dim)
        ws1, bs1 = init_linear(next(kit), D_IN, out_dim)
        wsf, bsf = init_linear(next(kit), 2 * out_dim, out_dim)
        return dict(
            layers=[
                dict(w=w0, b=b0,
                     gamma=jnp.ones((HIDDEN,), jnp.float32),
                     beta=jnp.zeros((HIDDEN,), jnp.float32),
                     act='relu', ln=True, inputs=[0]),
                dict(w=w1, b=b1, gamma=None, beta=None,
                     act='none', ln=False, inputs=[1]),
            ],
            skip1_w=ws1, skip1_b=bs1, skipf_w=wsf, skipf_b=bsf,
        )

    params = {}
    params['esm_freq'] = make_mlp_params(N_FREQ)
    params['esm_rare'] = make_mlp_params(N_RARE)

    # LabelEncoder(BIO_DIM, GCN_OUT): conv1 -> 2*GCN_OUT, BN(2*GCN_OUT), tanh, conv2 -> GCN_OUT
    params['gcn1_w'], params['gcn1_b'] = init_linear(next(kit), BIO_DIM, 2 * GCN_OUT)
    params['gcn2_w'], params['gcn2_b'] = init_linear(next(kit), 2 * GCN_OUT, GCN_OUT)
    # freshly-initialized BatchNorm1d running stats / affine (eval mode)
    params['bn_gamma'] = jnp.ones((1, 2 * GCN_OUT), jnp.float32)
    params['bn_beta'] = jnp.zeros((1, 2 * GCN_OUT), jnp.float32)
    params['bn_mean'] = jnp.zeros((1, 2 * GCN_OUT), jnp.float32)
    params['bn_var'] = jnp.ones((1, 2 * GCN_OUT), jnp.float32)

    # Attention(concat_hidden=OUT_SHAPE, label_dimension=GCN_OUT, embedding_size=EMB, out_proj=OUT_SHAPE)
    params['wq'], params['bq'] = init_linear(next(kit), OUT_SHAPE, EMB)
    params['wk'], params['bk'] = init_linear(next(kit), GCN_OUT, EMB)
    params['wv'], params['bv'] = init_linear(next(kit), GCN_OUT, EMB)
    params['wf'], params['bf'] = init_linear(next(kit), EMB, OUT_SHAPE)

    # static buffers: label index maps, label graph, biobert node features
    freq_idx = jnp.arange(0, N_FREQ, dtype=jnp.int32)
    rare_idx = jnp.arange(N_FREQ, OUT_SHAPE, dtype=jnp.int32)
    src = jnp.arange(N_NODES, dtype=jnp.int32)
    dst = (src + 1) % N_NODES
    edge_index = jnp.stack([jnp.concatenate([src, dst]),
                            jnp.concatenate([dst, src])], axis=0)   # bidirectional ring
    a_norm = gcn_normalized_adjacency(edge_index, N_NODES).astype(jnp.bfloat16)
    biobert = jax.random.normal(next(kit), (N_NODES, BIO_DIM),
                                jnp.float32).astype(jnp.bfloat16)

    static = dict(out_shape=OUT_SHAPE, freq_idx=freq_idx, rare_idx=rare_idx,
                  a_norm=a_norm, biobert=biobert)

    # label embedding computed once (static graph + params, independent of x)
    z = precompute_label_embedding(params, static)
    z = jax.block_until_ready(z)

    # example input: data[0] = protein embeddings
    x = jax.random.normal(next(kit), (B, D_IN), jnp.float32)

    out = tfun_forward(x, params, static, z)
    out = jax.block_until_ready(out)
    assert out.shape == (B, OUT_SHAPE)
    assert bool(jnp.all(jnp.isfinite(out)))
    assert bool(jnp.all((out >= 0.0) & (out <= 1.0)))   # post-sigmoid range
    print("KERNEL_OK")
</pallas_src>

<mosaic_0001>
module attributes {stable_mosaic.version = 11 : i64} {
  func.func @_linear_kernel(%arg0: i32, %arg1: i32, %arg2: i32, %arg3: memref<16x128xbf16, #tpu.memory_space<vmem>>, %arg4: memref<128x128xbf16, #tpu.memory_space<vmem>>, %arg5: memref<1x128xf32, #tpu.memory_space<vmem>>, %arg6: memref<16x128xbf16, #tpu.memory_space<vmem>>, %arg7: memref<16x128xf32, #tpu.memory_space<vmem>>) attributes {dimension_semantics = [#tpu.dimension_semantics<parallel>, #tpu.dimension_semantics<parallel>, #tpu.dimension_semantics<arbitrary>], iteration_bounds = array<i64: 1, 1, 1>, scalar_prefetch = 0 : i64, scratch_operands = 1 : i64, tpu.core_type = #tpu.core_type<tc>, window_params = [{transform_indices = @transform_0, window_bounds = array<i64: 16, 128>}, {transform_indices = @transform_1, window_bounds = array<i64: 128, 128>}, {transform_indices = @transform_2, window_bounds = array<i64: 1, 128>}, {transform_indices = @transform_3, window_bounds = array<i64: 16, 128>}]} {
    %c0_i32 = arith.constant 0 : i32
    %0 = arith.cmpi eq, %arg2, %c0_i32 : i32
    %1 = arith.extui %0 : i1 to i32
    %c0_i32_0 = arith.constant 0 : i32
    %2 = arith.cmpi ne, %1, %c0_i32_0 : i32
    scf.if %2 {
      %cst_10 = arith.constant 0.000000e+00 : f32
      %12 = vector.broadcast %cst_10 : f32 to vector<16x128xf32>
      %c0_11 = arith.constant 0 : index
      %c0_12 = arith.constant 0 : index
      %13 = vector.load %arg7[%c0_11, %c0_12] : memref<16x128xf32, #tpu.memory_space<vmem>>, vector<16x128xf32>
      tpu.vector_store %arg7[%c0_11, %c0_12], %12 {strides = array<i32>} : memref<16x128xf32, #tpu.memory_space<vmem>>, vector<16x128xf32>,
    } else {
    }
    %c0 = arith.constant 0 : index
    %c0_1 = arith.constant 0 : index
    %3 = vector.load %arg7[%c0, %c0_1] : memref<16x128xf32, #tpu.memory_space<vmem>>, vector<16x128xf32>
    %c0_2 = arith.constant 0 : index
    %c0_3 = arith.constant 0 : index
    %4 = vector.load %arg3[%c0_2, %c0_3] : memref<16x128xbf16, #tpu.memory_space<vmem>>, vector<16x128xbf16>
    %c0_4 = arith.constant 0 : index
    %c0_5 = arith.constant 0 : index
    %5 = vector.load %arg4[%c0_4, %c0_5] : memref<128x128xbf16, #tpu.memory_space<vmem>>, vector<128x128xbf16>
    %cst = arith.constant dense<0.000000e+00> : vector<16x128xf32>
    %6 = tpu.matmul %4, %5, %cst {dimension_numbers = #tpu.dot_dimension_numbers<[1], [0], [0], [1], [0, 0, 1, 1], [], []>} : vector<16x128xbf16>, vector<128x128xbf16>, vector<16x128xf32> -> vector<16x128xf32>
    %7 = arith.addf %3, %6 : vector<16x128xf32>
    %c0_6 = arith.constant 0 : index
    %c0_7 = arith.constant 0 : index
    %8 = vector.load %arg7[%c0_6, %c0_7] : memref<16x128xf32, #tpu.memory_space<vmem>>, vector<16x128xf32>
    tpu.vector_store %arg7[%c0_6, %c0_7], %7 {strides = array<i32>} : memref<16x128xf32, #tpu.memory_space<vmem>>, vector<16x128xf32>,
    %c0_i32_8 = arith.constant 0 : i32
    %9 = arith.cmpi eq, %arg2, %c0_i32_8 : i32
    %10 = arith.extui %9 : i1 to i32
    %c0_i32_9 = arith.constant 0 : i32
    %11 = arith.cmpi ne, %10, %c0_i32_9 : i32
    scf.if %11 {
      %c0_10 = arith.constant 0 : index
      %c0_11 = arith.constant 0 : index
      %12 = vector.load %arg7[%c0_10, %c0_11] : memref<16x128xf32, #tpu.memory_space<vmem>>, vector<16x128xf32>
      %c0_12 = arith.constant 0 : index
      %c0_13 = arith.constant 0 : index
      %13 = vector.load %arg5[%c0_12, %c0_13] : memref<1x128xf32, #tpu.memory_space<vmem>>, vector<1x128xf32>
      %14 = vector.broadcast %13 : vector<1x128xf32> to vector<16x128xf32>
      %15 = arith.addf %12, %14 : vector<16x128xf32>
      %16 = arith.truncf %15 : vector<16x128xf32> to vector<16x128xbf16>
      %c0_14 = arith.constant 0 : index
      %c0_15 = arith.constant 0 : index
      %17 = vector.load %arg6[%c0_14, %c0_15] : memref<16x128xbf16, #tpu.memory_space<vmem>>, vector<16x128xbf16>
      tpu.vector_store %arg6[%c0_14, %c0_15], %16 {strides = array<i32>} : memref<16x128xbf16, #tpu.memory_space<vmem>>, vector<16x128xbf16>,
    } else {
    }
    return
  }
  func.func @transform_0(%arg0: i32, %arg1: i32, %arg2: i32) -> (i32, i32) {
    %c0_i32 = arith.constant 0 : i32
    return %arg0, %arg2 : i32, i32
  }
  func.func @transform_1(%arg0: i32, %arg1: i32, %arg2: i32) -> (i32, i32) {
    %c0_i32 = arith.constant 0 : i32
    return %arg2, %arg1 : i32, i32
  }
  func.func @transform_2(%arg0: i32, %arg1: i32, %arg2: i32) -> (i32, i32) {
    %c0_i32 = arith.constant 0 : i32
    %c0_i32_0 = arith.constant 0 : i32
    return %c0_i32, %arg1 : i32, i32
  }
  func.func @transform_3(%arg0: i32, %arg1: i32, %arg2: i32) -> (i32, i32) {
    %c0_i32 = arith.constant 0 : i32
    return %arg0, %arg1 : i32, i32
  }
}

</mosaic_0001>

<bundles_post_ra>
// kernel: tpu_custom_call.1
= control target key start
LH: loop header
LB: loop body
LE: loop exit
PB: predicated region body
PF: predicated region fallthrough
CT: control target
= control target key end

     0   :  { %8 = vsyncpa [#allocation4], 0  ;;  %s422_s0 = inlined_call_operand.hbm [shape: bf16[16,128], index: 0, kind: input, shape index: {}]   ;;  %s423_s1 = inlined_call_operand.hbm [shape: bf16[128,128], index: 1, kind: input, shape index: {}]   ;;  %s424_s2 = inlined_call_operand.vmem [shape: f32[1,128], index: 2, kind: input, shape index: {}]   ;;  %s425_s3 = inlined_call_operand.hbm [shape: bf16[16,128], index: 3, kind: output, shape index: {}]  }
   0x1   :  { %9 = vsyncpa [#allocation7], 0 }
   0x2   :  { %10 = vsyncpa [#allocation5], 0  ;;  %s347_s12 = smov [#allocation3]   ;;  %s275_s16 = scalar_lea.hbm %s422_s0, 128 }
   0x3   :  { %s16_s13 = sshll.u32 %s347_s12, 4  ;;  %p276_p0 = scmp.ne.s32.totalorder %s422_s0, %s275_s16  ;;  %s17_s13 = int_to_ptr.vmem [resolvable:$true] %s16_s13 }
   0x4   :  { %p279_p1 = scmp.lt.u32.totalorder %s275_s16, %s422_s0 }
   0x6   :  { %p281_p2 = pnand %p279_p1, %p276_p0 }
   0x8   :  { %284 = shalt.err (!%p281_p2)
}
   0x9   :  { %s285_s21 = scalar_lea.vmem %s17_s13, 128  ;;  %p290_p4 = scmp.lt.s32.totalorder %s17_s13, %s17_s13 }
   0xa   :  { %p286_p3 = scmp.ne.s32.totalorder %s17_s13, %s285_s21  ;;  %p291_p5 = scmp.lt.s32.totalorder %s285_s21, %s285_s21 }
   0xc   :  { %p292_p6 = por %p291_p5, %p290_p4 }
   0xe   :  { %p293_p7 = pnand %p292_p6, %p286_p3 }
  0x10   :  { %296 = shalt.err (!%p293_p7)
}
  0x11   :  { %s348_s22 = smov 64   ;;  %s349_s23 = smov 4  }
  0x12   :  { %22 = dma.hbm_to_vmem [thread:$0]  %s422_s0, 128, %s17_s13, [#allocation4], %s348_s22, %s348_s22, %s349_s23  }
  0x13   :  { %s350_s26 = smov [#allocation6]   ;;  %s297_s30 = scalar_lea.hbm %s423_s1, 1024 }
  0x14   :  { %s28_s27 = sshll.u32 %s350_s26, 4  ;;  %p298_p8 = scmp.ne.s32.totalorder %s423_s1, %s297_s30  ;;  %s29_s27 = int_to_ptr.vmem [resolvable:$true] %s28_s27 }
  0x15   :  { %p301_p9 = scmp.lt.u32.totalorder %s297_s30, %s423_s1 }
  0x17   :  { %p303_p10 = pnand %p301_p9, %p298_p8 }
  0x19   :  { %306 = shalt.err (!%p303_p10)
}
  0x1a   :  { %s307_s8 = scalar_lea.vmem %s29_s27, 1024  ;;  %p312_p12 = scmp.lt.s32.totalorder %s29_s27, %s29_s27 }
  0x1b   :  { %p308_p11 = scmp.ne.s32.totalorder %s29_s27, %s307_s8  ;;  %p313_p13 = scmp.lt.s32.totalorder %s307_s8, %s307_s8 }
  0x1d   :  { %p314_p0 = por %p313_p13, %p312_p12 }
  0x1f   :  { %p315_p1 = pnand %p314_p0, %p308_p11 }
  0x21   :  { %318 = shalt.err (!%p315_p1)
}
  0x22   :  { %34 = dma.hbm_to_vmem [thread:$0]  %s423_s1, 1024, %s29_s27, [#allocation7], %s348_s22, %s348_s22, %s349_s23  }
  0x23   :  { %341 = dma.done.wait [#allocation4], 128  }
  0x24   :  { %342 = vsyncadd [#allocation4], 4294967168 }
  0x25   :  { %343 = dma.done.wait [#allocation7], 1024  }
  0x26   :  { %344 = vsyncadd [#allocation7], 4294966272  ;;  %v351_v0 = vmov 0.0   ;;  %vm352_vm0 = vmmov 0   ;;  %v266_v1 = vld [vmem:[#allocation6] sm:$0xff]   ;;  %v267_v2 = vld [vmem:[#allocation6 + $0x8] sm:$0xff]  }
  0x27   :  { %239 = vmatprep.subr.bf16.mxu0 %v351_v0  ;;  %255 = vmatprep.mubr.msk.bf16.mxu0 %vm352_vm0, %v351_v0  ;;  %v268_v3 = vld [vmem:[#allocation6 + $0x10] sm:$0xff]   ;;  %v269_v4 = vld [vmem:[#allocation6 + $0x18] sm:$0xff]   ;;  %v270_v5 = vld [vmem:[#allocation6 + $0x20] sm:$0xff]   ;;  %s353_s11 = smov [#allocation8]  }
  0x28   :  { %240 = vmatpush3.bf16.msra.mxu0 %v266_v1  ;;  %v271_v6 = vld [vmem:[#allocation6 + $0x28] sm:$0xff]   ;;  %v272_v7 = vld [vmem:[#allocation6 + $0x30] sm:$0xff]   ;;  %v273_v8 = vld [vmem:[#allocation6 + $0x38] sm:$0xff]   ;;  %s198_s12 = sshll.u32 %s353_s11, 4  ;;  %s199_s12 = int_to_ptr.vmem [resolvable:$true] %s198_s12 }
  0x29   :  { %241 = vmatprep.subr.bf16.mxu0 %v351_v0  ;;  %v274_v9 = vld [vmem:[#allocation3] sm:$0xff]   ;;  %s319_s13 = scalar_lea.vmem %s199_s12, 128  ;;  %p324_p3 = scmp.lt.s32.totalorder %s199_s12, %s199_s12 }
  0x2a   :  { %v220_v11 = vld [vmem:[%s424_s2] ss:$0 sm:$0xff]  ;;  %p320_p2 = scmp.ne.s32.totalorder %s199_s12, %s319_s13  ;;  %p325_p4 = scmp.lt.s32.totalorder %s319_s13, %s319_s13 }
  0x2c   :  { %242 = vmatpush3.bf16.msra.mxu0 %v267_v2  ;;  %p326_p5 = por %p325_p4, %p324_p3 }
  0x2d   :  { %243 = vmatprep.subr.bf16.mxu0 %v351_v0 }
  0x2e   :  { %p327_p6 = pnand %p326_p5, %p320_p2 }
  0x30   :  { %244 = vmatpush3.bf16.msra.mxu0 %v268_v3 }
  0x31   :  { %245 = vmatprep.subr.bf16.mxu0 %v351_v0 }
  0x34   :  { %246 = vmatpush3.bf16.msra.mxu0 %v269_v4 }
  0x35   :  { %247 = vmatprep.subr.bf16.mxu0 %v351_v0 }
  0x38   :  { %248 = vmatpush3.bf16.msra.mxu0 %v270_v5 }
  0x39   :  { %249 = vmatprep.subr.bf16.mxu0 %v351_v0 }
  0x3c   :  { %250 = vmatpush3.bf16.msra.mxu0 %v271_v6 }
  0x3d   :  { %251 = vmatprep.subr.bf16.mxu0 %v351_v0 }
  0x40   :  { %252 = vmatpush3.bf16.msra.mxu0 %v272_v7 }
  0x41   :  { %253 = vmatprep.subr.bf16.mxu0 %v351_v0 }
  0x44   :  { %254 = vmatpush3.bf16.msra.mxu0 %v273_v8 }
  0x47   :  { %256 = vmatmul.mubr.bf16.vlgmr.msra.gmra.mrb[0].mxu0 %v274_v9 }
 0x11a   :  { %v158_v10 = vpop.f32.mrb[0].mxu0 }
 0x11b   :  { %v257_v12 = vpop.f32.mrb[1].mxu0  ;;  %v181_v14 = vadd.f32 %v220_v11, %v158_v10 }
 0x11c   :  { %v161_v13 = vpop.f32.mrb[2].mxu0 }
 0x11d   :  { %v182_v15 = vadd.f32 %v220_v11, %v161_v13  ;;  %v258_v16 = vpop.f32.mrb[3].mxu0 }
 0x11f   :  { %v228_v17 = vpack.c.bf16 %v182_v15, %v181_v14 }
 0x121   :  { %229 = vst [vmem:[#allocation8] sm:$0xff] %v228_v17  }
 0x122   :  { %330 = shalt.err (!%p327_p6)
}
 0x123   :  { %s331_s2 = scalar_lea.hbm %s425_s3, 128 }
 0x124   :  { %p332_p7 = scmp.ne.s32.totalorder %s425_s3, %s331_s2  ;;  %p335_p8 = scmp.lt.u32.totalorder %s331_s2, %s425_s3 }
 0x126   :  { %p337_p9 = pnand %p335_p8, %p332_p7 }
 0x128   :  { %340 = shalt.err (!%p337_p9)
}
 0x129   :  { %204 = dma.vmem_to_hbm [thread:$0]  %s199_s12, 128, %s425_s3, [#allocation5], %s348_s22, %s348_s22, %s349_s23  }
 0x12a   :  { %345 = dma.done.wait [#allocation5], 128  }
 0x12b   :  { %346 = vsyncadd [#allocation5], 4294967168 }
 0x12c   :  { %208 = vsyncpa [#allocation4], 1 }
 0x12d   :  { %209 = vsyncpa [#allocation7], 1 }
 0x12e   :  { %210 = vsyncpa [#allocation5], 1 }

</bundles_post_ra>
